<compile_context>
chip_gen: v5e
topology: v5e:2x2
jax: 0.10.0
libtpu: 0.0.40
codegen_flags: <defaults>
</compile_context>

<pallas_src>
import jax
import jax.numpy as jnp
from jax.experimental import pallas as pl
from jax.experimental.pallas import tpu as pltpu

IN_FEATURES = 784
HIDDEN = 32
OUT_FEATURES = 10
TM_MAX = 2048        # f32 x tile: 2 x 2048 x 784 x 4B ~= 12.5 MiB double-buffered
ROW_ALIGN = 8        # f32 sublane packing -> row tiles multiple of 8


def _round_up(n, m):
    return ((n + m - 1) // m) * m


def mlp_kernel(x_ref, w1_ref, b1_ref, w2_ref, b2_ref, out_ref):
    # x: (tm, 784) f32, w1: (784, 32) bf16, b1: (1, 32) f32,
    # w2: (32, 10) f32, b2: (1, 10) f32, out: (tm, 10) f32.
    x = x_ref[...].astype(jnp.bfloat16)                                 # cast in-register
    h = jnp.dot(x, w1_ref[...], preferred_element_type=jnp.float32)     # MXU, f32 acc
    h = jnp.maximum(h + b1_ref[...], 0.0)                               # bias + ReLU in f32
    y = jnp.dot(h, w2_ref[...], preferred_element_type=jnp.float32)     # tiny f32 dot
    out_ref[...] = (y + b2_ref[...]).astype(out_ref.dtype)


def network_forward(x, w1, b1, w2, b2):
    # torch semantics: if input has >2 dims, flatten to (-1, 784).
    if x.ndim > 2:
        x = x.reshape(-1, IN_FEATURES)
    B = x.shape[0]

    # w1 in bf16 (one-time ~100 KB pass, negligible); w2/b1/b2 stay f32.
    w1_bf = w1.astype(jnp.bfloat16)

    # Tile: big enough to amortize per-step overhead, small enough for VMEM on
    # every generation, and split so moderate batches give >=2 tiles (v7x TCs).
    tm = min(TM_MAX, max(ROW_ALIGN, _round_up(pl.cdiv(B, 2), ROW_ALIGN)))
    num_tiles = pl.cdiv(B, tm)

    flops = 2 * B * IN_FEATURES * HIDDEN + 2 * B * HIDDEN * OUT_FEATURES
    bytes_accessed = (B * IN_FEATURES * 4                 # x (f32)
                      + w1_bf.size * 2 + w2.size * 4
                      + b1.size * 4 + b2.size * 4
                      + B * OUT_FEATURES * 4)             # out (f32)

    out = pl.pallas_call(
        mlp_kernel,
        out_shape=jax.ShapeDtypeStruct((B, OUT_FEATURES), jnp.float32),
        grid=(num_tiles,),
        in_specs=[
            pl.BlockSpec((tm, IN_FEATURES), lambda i: (i, 0)),        # x: streamed per tile
            pl.BlockSpec((IN_FEATURES, HIDDEN), lambda i: (0, 0)),    # w1: resident
            pl.BlockSpec((1, HIDDEN), lambda i: (0, 0)),              # b1: resident
            pl.BlockSpec((HIDDEN, OUT_FEATURES), lambda i: (0, 0)),   # w2: resident
            pl.BlockSpec((1, OUT_FEATURES), lambda i: (0, 0)),        # b2: resident
        ],
        out_specs=pl.BlockSpec((tm, OUT_FEATURES), lambda i: (i, 0)),
        compiler_params=pltpu.CompilerParams(
            dimension_semantics=("parallel",),
            vmem_limit_bytes=32 * 1024 * 1024,
        ),
        cost_estimate=pl.CostEstimate(
            flops=flops, transcendentals=0, bytes_accessed=bytes_accessed),
    )(x, w1_bf, b1, w2, b2)

    return out


def init_params(key):
    # Deterministic init mimicking torch.nn.Linear defaults:
    # U(-1/sqrt(fan_in), 1/sqrt(fan_in)) for both weight and bias.
    k1, k2, k3, k4 = jax.random.split(key, 4)
    bound1 = 1.0 / jnp.sqrt(IN_FEATURES)
    bound2 = 1.0 / jnp.sqrt(HIDDEN)
    w1 = jax.random.uniform(k1, (IN_FEATURES, HIDDEN), jnp.float32, -bound1, bound1)
    b1 = jax.random.uniform(k2, (1, HIDDEN), jnp.float32, -bound1, bound1)
    w2 = jax.random.uniform(k3, (HIDDEN, OUT_FEATURES), jnp.float32, -bound2, bound2)
    b2 = jax.random.uniform(k4, (1, OUT_FEATURES), jnp.float32, -bound2, bound2)
    return w1, b1, w2, b2


if __name__ == "__main__":
    key = jax.random.PRNGKey(0)
    kx, kp = jax.random.split(key)
    # MNIST-like NCHW input: batch=2, channels=1, 28x28 (flattens to 784).
    x = jax.random.normal(kx, (2, 1, 28, 28), jnp.float32)
    w1, b1, w2, b2 = init_params(kp)

    out = network_forward(x, w1, b1, w2, b2)
    out = jax.block_until_ready(out)
    assert out.shape == (2, OUT_FEATURES)

    # Reference with matching semantics (bf16 first layer, f32 accumulation).
    xf = x.reshape(-1, IN_FEATURES)
    h_ref = jnp.maximum(
        jnp.dot(xf.astype(jnp.bfloat16), w1.astype(jnp.bfloat16),
                preferred_element_type=jnp.float32) + b1, 0.0)
    ref = jnp.dot(h_ref, w2, preferred_element_type=jnp.float32) + b2
    assert jnp.allclose(out, ref, atol=2e-2, rtol=2e-2)

    # Loose check against the pure-f32 torch-semantics forward (bf16 quant error).
    ref_f32 = jnp.maximum(xf @ w1 + b1, 0.0) @ w2 + b2
    assert jnp.allclose(out, ref_f32, atol=6e-2, rtol=6e-2)

    print("KERNEL_OK")
</pallas_src>

<mosaic_0001>
module attributes {stable_mosaic.version = 11 : i64} {
  func.func @mlp_kernel(%arg0: i32, %arg1: memref<8x784xf32, #tpu.memory_space<vmem>>, %arg2: memref<784x32xbf16, #tpu.memory_space<vmem>>, %arg3: memref<1x32xf32, #tpu.memory_space<vmem>>, %arg4: memref<32x10xf32, #tpu.memory_space<vmem>>, %arg5: memref<1x10xf32, #tpu.memory_space<vmem>>, %arg6: memref<8x10xf32, #tpu.memory_space<vmem>>) attributes {dimension_semantics = [#tpu.dimension_semantics<parallel>], iteration_bounds = array<i64: 1>, scalar_prefetch = 0 : i64, scratch_operands = 0 : i64, tpu.core_type = #tpu.core_type<tc>, window_params = [{transform_indices = @transform_0, window_bounds = array<i64: 8, 784>}, {pipeline_mode = #tpu.pipeline_mode<synchronous>, transform_indices = @transform_1, window_bounds = array<i64: 784, 32>}, {pipeline_mode = #tpu.pipeline_mode<synchronous>, transform_indices = @transform_2, window_bounds = array<i64: 1, 32>}, {pipeline_mode = #tpu.pipeline_mode<synchronous>, transform_indices = @transform_3, window_bounds = array<i64: 32, 10>}, {pipeline_mode = #tpu.pipeline_mode<synchronous>, transform_indices = @transform_4, window_bounds = array<i64: 1, 10>}, {transform_indices = @transform_5, window_bounds = array<i64: 8, 10>}]} {
    %c0 = arith.constant 0 : index
    %c0_0 = arith.constant 0 : index
    %0 = vector.load %arg1[%c0, %c0_0] : memref<8x784xf32, #tpu.memory_space<vmem>>, vector<8x784xf32>
    %1 = arith.truncf %0 : vector<8x784xf32> to vector<8x784xbf16>
    %c0_1 = arith.constant 0 : index
    %c0_2 = arith.constant 0 : index
    %2 = vector.load %arg2[%c0_1, %c0_2] : memref<784x32xbf16, #tpu.memory_space<vmem>>, vector<784x32xbf16>
    %cst = arith.constant dense<0.000000e+00> : vector<8x32xf32>
    %3 = tpu.matmul %1, %2, %cst {dimension_numbers = #tpu.dot_dimension_numbers<[1], [0], [0], [1], [0, 0, 1, 1], [], []>} : vector<8x784xbf16>, vector<784x32xbf16>, vector<8x32xf32> -> vector<8x32xf32>
    %c0_3 = arith.constant 0 : index
    %c0_4 = arith.constant 0 : index
    %4 = vector.load %arg3[%c0_3, %c0_4] : memref<1x32xf32, #tpu.memory_space<vmem>>, vector<1x32xf32>
    %5 = vector.broadcast %4 : vector<1x32xf32> to vector<8x32xf32>
    %6 = arith.addf %3, %5 : vector<8x32xf32>
    %cst_5 = arith.constant 0.000000e+00 : f32
    %7 = vector.broadcast %cst_5 : f32 to vector<8x32xf32>
    %8 = arith.maximumf %6, %7 : vector<8x32xf32>
    %c0_6 = arith.constant 0 : index
    %c0_7 = arith.constant 0 : index
    %9 = vector.load %arg4[%c0_6, %c0_7] : memref<32x10xf32, #tpu.memory_space<vmem>>, vector<32x10xf32>
    %cst_8 = arith.constant dense<0.000000e+00> : vector<8x10xf32>
    %10 = tpu.matmul %8, %9, %cst_8 {dimension_numbers = #tpu.dot_dimension_numbers<[1], [0], [0], [1], [0, 0, 1, 1], [], []>} : vector<8x32xf32>, vector<32x10xf32>, vector<8x10xf32> -> vector<8x10xf32>
    %c0_9 = arith.constant 0 : index
    %c0_10 = arith.constant 0 : index
    %11 = vector.load %arg5[%c0_9, %c0_10] : memref<1x10xf32, #tpu.memory_space<vmem>>, vector<1x10xf32>
    %12 = vector.broadcast %11 : vector<1x10xf32> to vector<8x10xf32>
    %13 = arith.addf %10, %12 : vector<8x10xf32>
    %c0_11 = arith.constant 0 : index
    %c0_12 = arith.constant 0 : index
    %14 = vector.load %arg6[%c0_11, %c0_12] : memref<8x10xf32, #tpu.memory_space<vmem>>, vector<8x10xf32>
    tpu.vector_store %arg6[%c0_11, %c0_12], %13 {strides = array<i32>} : memref<8x10xf32, #tpu.memory_space<vmem>>, vector<8x10xf32>,
    return
  }
  func.func @transform_0(%arg0: i32) -> (i32, i32) {
    %c0_i32 = arith.constant 0 : i32
    %c0_i32_0 = arith.constant 0 : i32
    return %arg0, %c0_i32 : i32, i32
  }
  func.func @transform_1(%arg0: i32) -> (i32, i32) {
    %c0_i32 = arith.constant 0 : i32
    %c0_i32_0 = arith.constant 0 : i32
    %c0_i32_1 = arith.constant 0 : i32
    return %c0_i32, %c0_i32_0 : i32, i32
  }
  func.func @transform_2(%arg0: i32) -> (i32, i32) {
    %c0_i32 = arith.constant 0 : i32
    %c0_i32_0 = arith.constant 0 : i32
    %c0_i32_1 = arith.constant 0 : i32
    return %c0_i32, %c0_i32_0 : i32, i32
  }
  func.func @transform_3(%arg0: i32) -> (i32, i32) {
    %c0_i32 = arith.constant 0 : i32
    %c0_i32_0 = arith.constant 0 : i32
    %c0_i32_1 = arith.constant 0 : i32
    return %c0_i32, %c0_i32_0 : i32, i32
  }
  func.func @transform_4(%arg0: i32) -> (i32, i32) {
    %c0_i32 = arith.constant 0 : i32
    %c0_i32_0 = arith.constant 0 : i32
    %c0_i32_1 = arith.constant 0 : i32
    return %c0_i32, %c0_i32_0 : i32, i32
  }
  func.func @transform_5(%arg0: i32) -> (i32, i32) {
    %c0_i32 = arith.constant 0 : i32
    %c0_i32_0 = arith.constant 0 : i32
    return %arg0, %c0_i32 : i32, i32
  }
}

</mosaic_0001>

<bundles_post_ra>
// kernel: tpu_custom_call.1
= control target key start
LH: loop header
LB: loop body
LE: loop exit
PB: predicated region body
PF: predicated region fallthrough
CT: control target
= control target key end

     0   :  { %10 = vsyncpa [#allocation3], 0  ;;  %vm470_vm0 = vcmask 130048   ;;  %vm574_vm1 = vcmask 261120   ;;  %vm598_vm2 = vcmask 80896   ;;  %s1121_s0 = inlined_call_operand.vmem [shape: f32[2,784], index: 0, kind: input, shape index: {}]   ;;  %s1122_s1 = inlined_call_operand.vmem [shape: bf16[784,32], index: 1, kind: input, shape index: {}]   ;;  %s1123_s2 = inlined_call_operand.vmem [shape: f32[1,32], index: 2, kind: input, shape index: {}]   ;;  %s1124_s3 = inlined_call_operand.vmem [shape: f32[32,10], index: 3, kind: input, shape index: {}]   ;;  %s1125_s4 = inlined_call_operand.vmem [shape: f32[1,10], index: 4, kind: input, shape index: {}]   ;;  %s1126_s5 = inlined_call_operand.hbm [shape: f32[2,10], index: 5, kind: output, shape index: {}]  }
   0x1   :  { %v823_v0 = vld [vmem:[%s1122_s1 + $0x38] sm:$0xff]  ;;  %v822_v3 = vld [vmem:[%s1122_s1 + $0x30] sm:$0xff]  ;;  %v821_v7 = vld [vmem:[%s1122_s1 + $0x28] sm:$0xff] }
   0x2   :  { %v831_v1 = vld [vmem:[%s1122_s1 + $0x78] sm:$0xff]  ;;  %474 = vmatpush.bf16.msra.mxu0 %v823_v0  ;;  %v830_v4 = vld [vmem:[%s1122_s1 + $0x70] sm:$0xff]  ;;  %v829_v8 = vld [vmem:[%s1122_s1 + $0x68] sm:$0xff] }
   0x3   :  { %v839_v2 = vld [vmem:[%s1122_s1 + $0xb8] sm:$0xff]  ;;  %487 = vmatpush.bf16.msra.mxu1 %v831_v1  ;;  %v838_v5 = vld [vmem:[%s1122_s1 + $0xb0] sm:$0xff]  ;;  %v837_v9 = vld [vmem:[%s1122_s1 + $0xa8] sm:$0xff] }
   0x4   :  { %500 = vmatpush.bf16.msra.mxu2 %v839_v2  ;;  %v847_v6 = vld [vmem:[%s1122_s1 + $0xf8] sm:$0xff]  ;;  %v846_v10 = vld [vmem:[%s1122_s1 + $0xf0] sm:$0xff]  ;;  %v820_v11 = vld [vmem:[%s1122_s1 + $0x20] sm:$0xff] }
   0x5   :  { %513 = vmatpush.bf16.msra.mxu3 %v847_v6  ;;  %v828_v12 = vld [vmem:[%s1122_s1 + $0x60] sm:$0xff]  ;;  %v845_v14 = vld [vmem:[%s1122_s1 + $0xe8] sm:$0xff]  ;;  %v819_v19 = vld [vmem:[%s1122_s1 + $0x18] sm:$0xff] }
   0x6   :  { %475 = vmatpush.bf16.msra.mxu0 %v822_v3  ;;  %v836_v13 = vld [vmem:[%s1122_s1 + $0xa0] sm:$0xff]  ;;  %v24_v16 = vld [vmem:[%s1121_s0 + $0xe] sm:$0xff]  ;;  %v827_v20 = vld [vmem:[%s1122_s1 + $0x58] sm:$0xff] }
   0x7   :  { %488 = vmatpush.bf16.msra.mxu1 %v830_v4  ;;  %v22_v15 = vld [vmem:[%s1121_s0] sm:$0xff]  ;;  %v28_v18 = vld [vmem:[%s1121_s0 + $0x2a] sm:$0xff]  ;;  %40 = vst [vmem:[#allocation1 + $0x1] ss:$4 sm:$0xff] %v24_v16  ;;  %v835_v21 = vld [vmem:[%s1122_s1 + $0x98] sm:$0xff] }
   0x8   :  { %501 = vmatpush.bf16.msra.mxu2 %v838_v5  ;;  %v26_v17 = vld [vmem:[%s1121_s0 + $0x1c] sm:$0xff]  ;;  %38 = vst [vmem:[#allocation1] ss:$4 sm:$0xff] %v22_v15  ;;  %v818_v23 = vld [vmem:[%s1122_s1 + $0x10] sm:$0xff]  ;;  %v23_v24 = vld [vmem:[%s1121_s0 + $0x8] sm:$0x3f] }
   0x9   :  { %514 = vmatpush.bf16.msra.mxu3 %v846_v10  ;;  %42 = vst [vmem:[#allocation1 + $0x2] ss:$4 sm:$0xff] %v26_v17  ;;  %v844_v22 = vld [vmem:[%s1122_s1 + $0xe0] sm:$0xff]  ;;  %v25_v25 = vld [vmem:[%s1121_s0 + $0x16] sm:$0x3f]  ;;  %v817_v31 = vld [vmem:[%s1122_s1 + $0x8] sm:$0xff] }
   0xa   :  { %476 = vmatpush.bf16.msra.mxu0 %v821_v7  ;;  %44 = vst [vmem:[#allocation1 + $0x3] ss:$4 sm:$0xff] %v28_v18  ;;  %v826_v26 = vld [vmem:[%s1122_s1 + $0x50] sm:$0xff]  ;;  %v27_v27 = vld [vmem:[%s1121_s0 + $0x24] sm:$0x3f]  ;;  %v843_v30 = vld [vmem:[%s1122_s1 + $0xd8] sm:$0xff] }
   0xb   :  { %489 = vmatpush.bf16.msra.mxu1 %v829_v8  ;;  %v29_v28 = vld [vmem:[%s1121_s0 + $0x32] sm:$0x3f]  ;;  %46 = vst [vmem:[#allocation1 + $0x20] ss:$4 sm:$0xff] %v23_v24  ;;  %v825_v32 = vld [vmem:[%s1122_s1 + $0x48] sm:$0xff]  ;;  %v816_v35 = vld [vmem:[%s1122_s1] sm:$0xff] }
   0xc   :  { %502 = vmatpush.bf16.msra.mxu2 %v837_v9  ;;  %v834_v29 = vld [vmem:[%s1122_s1 + $0x90] sm:$0xff]  ;;  %48 = vst [vmem:[#allocation1 + $0x21] ss:$4 sm:$0xff] %v25_v25  ;;  %v833_v33 = vld [vmem:[%s1122_s1 + $0x88] sm:$0xff]  ;;  %v824_v36 = vld [vmem:[%s1122_s1 + $0x40] sm:$0xff] }
   0xd   :  { %515 = vmatpush.bf16.msra.mxu3 %v845_v14  ;;  %50 = vst [vmem:[#allocation1 + $0x22] ss:$4 sm:$0xff] %v27_v27  ;;  %v842_v34 = vld [vmem:[%s1122_s1 + $0xd0] sm:$0xff]  ;;  %v855_v39 = vld [vmem:[%s1122_s1 + $0x138] sm:$0xff]  ;;  %v832_v41 = vld [vmem:[%s1122_s1 + $0x80] sm:$0xff] }
   0xe   :  { %477 = vmatpush.bf16.msra.mxu0 %v820_v11  ;;  %52 = vst [vmem:[#allocation1 + $0x23] ss:$4 sm:$0xff] %v29_v28  ;;  %v863_v40 = vld [vmem:[%s1122_s1 + $0x178] sm:$0xff]  ;;  %v841_v42 = vld [vmem:[%s1122_s1 + $0xc8] sm:$0xff]  ;;  %v864_v46 = vld [vmem:[%s1122_s1 + $0x180] sm:$0xff] }
   0xf   :  { %490 = vmatpush.bf16.msra.mxu1 %v828_v12  ;;  %v854_v47 = vld [vmem:[%s1122_s1 + $0x130] sm:$0xff]  ;;  %v840_v50 = vld [vmem:[%s1122_s1 + $0xc0] sm:$0xff]  ;;  %v853_v52 = vld [vmem:[%s1122_s1 + $0x128] sm:$0xff] }
  0x10   :  { %503 = vmatpush.bf16.msra.mxu2 %v836_v13  ;;  %v862_v48 = vld [vmem:[%s1122_s1 + $0x170] sm:$0xff]  ;;  %v861_v53 = vld [vmem:[%s1122_s1 + $0x168] sm:$0xff]  ;;  %v852_v55 = vld [vmem:[%s1122_s1 + $0x120] sm:$0xff] }
  0x11   :  { %516 = vmatpush.bf16.msra.mxu3 %v844_v22  ;;  %v53_v37 = vld.sshfl [vmem:[#allocation1] sm:$0xff pattern:$0x73625140]  ;;  %v54_v38 = vld.sshfl [vmem:[#allocation1 + $0x8] sm:$0xff pattern:$0x73625140] }
  0x12   :  { %478 = vmatpush.bf16.msra.mxu0 %v819_v19  ;;  %v55_v43 = vld.sshfl [vmem:[#allocation1 + $0x10] sm:$0xff pattern:$0x73625140]  ;;  %v67_v44 = vpack.c.bf16 %v53_v37, %v53_v37  ;;  %v68_v45 = vpack.c.bf16 %v54_v38, %v54_v38  ;;  %v56_v51 = vld.sshfl [vmem:[#allocation1 + $0x18] sm:$0xff pattern:$0x73625140] }
  0x13   :  { %491 = vmatpush.bf16.msra.mxu1 %v827_v20  ;;  %v69_v49 = vpack.c.bf16 %v55_v43, %v55_v43  ;;  %v70_v54 = vpack.c.bf16 %v56_v51, %v56_v51  ;;  %v860_v56 = vld [vmem:[%s1122_s1 + $0x160] sm:$0xff]  ;;  %v851_v57 = vld [vmem:[%s1122_s1 + $0x118] sm:$0xff]  ;;  %v850_v60 = vld [vmem:[%s1122_s1 + $0x110] sm:$0xff] }
  0x14   :  { %504 = vmatpush.bf16.msra.mxu2 %v835_v21  ;;  %v859_v58 = vld [vmem:[%s1122_s1 + $0x158] sm:$0xff]  ;;  %v858_v61 = vld [vmem:[%s1122_s1 + $0x150] sm:$0xff]  ;;  %v849_v63 = vld [vmem:[%s1122_s1 + $0x108] sm:$0xff] }
  0x15   :  { %517 = vmatpush.bf16.msra.mxu3 %v843_v30  ;;  %v59_v59 = vld.sshfl [vmem:[#allocation1 + $0x30] sm:$0xff pattern:$0x73625140]  ;;  %v857_v0 = vld [vmem:[%s1122_s1 + $0x148] sm:$0xff]  ;;  %v848_v1 = vld [vmem:[%s1122_s1 + $0x100] sm:$0xff] }
  0x16   :  { %479 = vmatpush.bf16.msra.mxu0 %v818_v23  ;;  %v73_v62 = vpack.c.bf16 %v59_v59, %v59_v59  ;;  %v856_v2 = vld [vmem:[%s1122_s1 + $0x140] sm:$0xff]  ;;  %v58_v4 = vld.sshfl [vmem:[#allocation1 + $0x28] sm:$0xff pattern:$0x73625140]  ;;  %v569_v7 = vld [vmem:[%s1124_s3 + $0x18] sm:$0xff] }
  0x17   :  { %492 = vmatpush.bf16.msra.mxu1 %v826_v26  ;;  %v57_v3 = vld.sshfl [vmem:[#allocation1 + $0x20] sm:$0xff pattern:$0x73625140]  ;;  %v72_v6 = vpack.c.bf16 %v58_v4, %v58_v4  ;;  %v568_v8 = vld [vmem:[%s1124_s3 + $0x10] sm:$0xff]  ;;  %v567_v11 = vld [vmem:[%s1124_s3 + $0x8] sm:$0xff] }
  0x18   :  { %505 = vmatpush.bf16.msra.mxu2 %v834_v29  ;;  %v71_v5 = vpack.c.bf16 %v57_v3, %v57_v3  ;;  %v566_v12 = vld [vmem:[%s1124_s3] sm:$0xff] }
  0x19   :  { %518 = vmatpush.bf16.msra.mxu3 %v842_v34  ;;  %v868_v16 = vld [vmem:[%s1123_s2] ss:$0 sm:$0xff] }
  0x1a   :  { %480 = vmatpush.bf16.msra.mxu0 %v817_v31  ;;  %v869_v34 = vld [vmem:[%s1125_s4] ss:$0 sm:$0xff] }
  0x1b   :  { %493 = vmatpush.bf16.msra.mxu1 %v825_v32 }
  0x1c   :  { %506 = vmatpush.bf16.msra.mxu2 %v833_v33 }
  0x1d   :  { %519 = vmatpush.bf16.msra.mxu3 %v841_v42 }
  0x1e   :  { %481 = vmatpush.bf16.msra.mxu0 %v816_v35 }
  0x1f   :  { %494 = vmatpush.bf16.msra.mxu1 %v824_v36 }
  0x20   :  { %507 = vmatpush.bf16.msra.mxu2 %v832_v41 }
  0x21   :  { %482 = vmatmul.bf16.vlgmr.msra.gmra.mxu0 %v67_v44  ;;  %520 = vmatpush.bf16.msra.mxu3 %v840_v50 }
  0x22   :  { %526 = vmatpush.bf16.msrb.mxu0 %v855_v39  ;;  %495 = vmatmul.bf16.vlgmr.msra.gmra.mxu1 %v68_v45 }
  0x23   :  { %539 = vmatpush.bf16.msrb.mxu1 %v863_v40  ;;  %508 = vmatmul.bf16.vlgmr.msra.gmra.mxu2 %v69_v49 }
  0x24   :  { %559 = vmatpush.bf16.msrb.mxu2 %v864_v46  ;;  %521 = vmatmul.bf16.vlgmr.msra.gmra.mxu3 %v70_v54 }
  0x25   :  { %590 = vmatpush.msrb.mxu3 %v569_v7 }
  0x26   :  { %527 = vmatpush.bf16.msrb.mxu0 %v854_v47 }
  0x27   :  { %540 = vmatpush.bf16.msrb.mxu1 %v862_v48  ;;  %591 = vmatpush.msrb.mxu3 %v568_v8 }
  0x29   :  { %592 = vmatpush.msrb.mxu3 %v567_v11 }
  0x2a   :  { %528 = vmatpush.bf16.msrb.mxu0 %v853_v52 }
  0x2b   :  { %541 = vmatpush.bf16.msrb.mxu1 %v861_v53  ;;  %593 = vmatpush.msrb.mxu3 %v566_v12 }
  0x2e   :  { %529 = vmatpush.bf16.msrb.mxu0 %v852_v55 }
  0x2f   :  { %542 = vmatpush.bf16.msrb.mxu1 %v860_v56 }
  0x32   :  { %530 = vmatpush.bf16.msrb.mxu0 %v851_v57 }
  0x33   :  { %543 = vmatpush.bf16.msrb.mxu1 %v859_v58  ;;  %814 = vmatmul.msk.bf16.vlgmr.msrb.gmra.mxu2 %vm470_vm0, %v73_v62 }
  0x36   :  { %531 = vmatpush.bf16.msrb.mxu0 %v850_v60 }
  0x37   :  { %544 = vmatpush.bf16.msrb.mxu1 %v858_v61 }
  0x3a   :  { %532 = vmatpush.bf16.msrb.mxu0 %v849_v63 }
  0x3b   :  { %545 = vmatpush.bf16.msrb.mxu1 %v857_v0 }
  0x3e   :  { %533 = vmatpush.bf16.msrb.mxu0 %v848_v1 }
  0x3f   :  { %546 = vmatpush.bf16.msrb.mxu1 %v856_v2 }
  0x41   :  { %534 = vmatmul.bf16.vlgmr.msrb.gmra.mxu0 %v71_v5 }
  0x42   :  { %547 = vmatmul.bf16.vlgmr.msrb.gmra.mxu1 %v72_v6 }
  0x9e   :  { %v483_v9 = vpop.f32.mrf.mxu0 }
  0x9f   :  { %v496_v10 = vpop.f32.mrf.mxu1  ;;  %v484_v18 = vadd.f32 %v868_v16, %v483_v9 }
  0xa1   :  { %v497_v20 = vadd.f32 %v496_v10, %v484_v18 }
  0xa6   :  { %v485_v13 = vpop.f32.mrf.mxu0  ;;  %v509_v15 = vpop.f32.mrf.mxu2 }
  0xa7   :  { %v498_v14 = vpop.f32.mrf.mxu1  ;;  %v522_v17 = vpop.f32.mrf.mxu3  ;;  %v510_v22 = vadd.f32 %v509_v15, %v497_v20 }
  0xa9   :  { %v523_v24 = vadd.f32 %v522_v17, %v510_v22 }
  0xae   :  { %v511_v19 = vpop.f32.mrf.mxu2 }
  0xaf   :  { %v524_v21 = vpop.f32.mrf.mxu3 }
  0xb6   :  { %v561_v23 = vpop.f32.mrf.mxu2 }
  0xbe   :  { %v535_v25 = vpop.f32.mrf.mxu0  ;;  %v563_v29 = vpop.f32.mrf.mxu2 }
  0xbf   :  { %v548_v26 = vpop.f32.mrf.mxu1  ;;  %v536_v27 = vadd.f32 %v535_v25, %v523_v24 }
  0xc1   :  { %v549_v28 = vadd.f32 %v548_v26, %v536_v27 }
  0xc3   :  { %v562_v30 = vadd.f32 %v561_v23, %v549_v28 }
  0xc5   :  { %v565_v31 = vmax.f32 %v562_v30, 0.0 }
  0xc6   :  { %v537_v32 = vpop.f32.mrf.mxu0 }
  0xc7   :  { %v550_v33 = vpop.f32.mrf.mxu1  ;;  %815 = vmatmul.msk.f32.vlgmr.msrb.gmra.mxu3 %vm574_vm1, %v565_v31 }
 0x14a   :  { %v595_v35 = vpop.f32.mrf.mxu3 }
 0x14b   :  { %v596_v36 = vadd.f32 %v869_v34, %v595_v35 }
 0x14d   :  { %599 = vst.msk [vmem:[#allocation2] sm:$0xff] %vm598_vm2, %v596_v36 }
 0x14e   :  { %603 = vsyncadd [#allocation3], 96  ;;  %s606_s15 = sshll.u32 %s1126_s5, 4  ;;  %s896_s16 = smov [#allocation2]   ;;  %s607_s15 = int_to_ptr.hbm [resolvable:$true] %s606_s15 }
 0x14f   :  { %s604_s17 = sshll.u32 %s896_s16, 4  ;;  %s897_s18 = smov 32   ;;  %s605_s17 = int_to_ptr.vmem [resolvable:$true] %s604_s17 }
 0x150   :  { %s898_s19 = smov 2  }
 0x151   :  { %612 = dma.vmem_to_hbm [thread:$0]  %s605_s17, 32, %s607_s15, [#allocation3], %s897_s18, %s897_s18, %s898_s19  }
 0x152   :  { %894 = dma.done.wait [#allocation3], 128  }
 0x153   :  { %895 = vsyncadd [#allocation3], 4294967168 }
 0x154   :  { %617 = vsyncpa [#allocation3], 1 }

</bundles_post_ra>
